<compile_context>
chip_gen: v7x
topology: tpu7x:2x2x1
jax: 0.10.0
libtpu: 0.0.40
codegen_flags: <defaults>
</compile_context>

<pallas_src>
import functools
import re

import jax
import jax.numpy as jnp
from jax.experimental import pallas as pl
from jax.experimental.pallas import tpu as pltpu


def _tpu_generation() -> int:
    """Best-effort TPU generation from device_kind ('TPU v5 lite'->5, 'TPU7x'->7)."""
    try:
        kind = jax.devices()[0].device_kind
    except Exception:
        return 0
    m = re.search(r"(\d+)", kind)
    return int(m.group(1)) if m else 0


def _round_down_mult(x: int, m: int) -> int:
    return (x // m) * m


def _block_spec(shape, index_map, buffer_count=None):
    """BlockSpec with optional explicit pipeline buffer count; falls back
    gracefully if this jax version does not expose pipeline_mode."""
    if buffer_count is not None:
        try:
            return pl.BlockSpec(shape, index_map,
                                pipeline_mode=pl.Buffered(buffer_count))
        except TypeError:
            pass
    return pl.BlockSpec(shape, index_map)


def mlp_kernel(x_ref, w1_ref, b1_ref, w2_ref, b2_ref, o_ref, acc_ref, *,
               act_dtype):
    # x_ref : (C_in, T)      channels-first spatial tile (input dtype)
    # w1_ref: (tile_h, C_in) bf16 (pre-transposed, hidden tile k)
    # b1_ref: (tile_h, 1)    act_dtype (bf16 on v6e/v7x, f32 on v5e)
    # w2_ref: (C_out, tile_h) bf16 (pre-transposed, hidden tile k)
    # b2_ref: (C_out, 1)     f32
    # o_ref : (C_out, T)
    # acc_ref: (C_out, T)    f32 accumulator scratch (resident across k)
    kh = pl.program_id(2)

    @pl.when(kh == 0)
    def _():
        acc_ref[...] = jnp.zeros_like(acc_ref)

    x = x_ref[...].astype(w1_ref.dtype)                       # bf16 MXU operand
    h = jnp.dot(w1_ref[...], x, preferred_element_type=jnp.float32)
    h = h.astype(act_dtype) + b1_ref[...]                     # bias add
    h = jnp.minimum(jnp.maximum(h, jnp.asarray(0.0, act_dtype)),
                    jnp.asarray(6.0, act_dtype))              # ReLU6
    acc_ref[...] += jnp.dot(w2_ref[...], h.astype(w2_ref.dtype),
                            preferred_element_type=jnp.float32)

    @pl.when(kh == pl.num_programs(2) - 1)
    def _():
        o_ref[...] = (acc_ref[...] + b2_ref[...]).astype(o_ref.dtype)


def mlp_pallas(x_nchw, w1, b1, w2, b2, *, tile_hw=None, tile_h=None,
               compute_dtype=jnp.bfloat16):
    """y = fc2(relu6(fc1(x))) with 1x1 convs.

    x_nchw: (B, C_in, H, W); w1: (C_in, hidden); b1: (hidden,)/(1, hidden);
    w2: (hidden, C_out); b2: (C_out,)/(1, C_out).
    Output dtype == input dtype (pass bf16 activations for bf16 pipelines).
    """
    B, C_in, H, W = x_nchw.shape
    hidden = w1.shape[1]
    C_out = w2.shape[1]
    HW = H * W

    gen = _tpu_generation()
    if gen >= 7:
        vmem_cap, num_tc, default_thw, act_dtype = 64 * 2**20, 2, 512, jnp.bfloat16
    elif gen == 6:
        vmem_cap, num_tc, default_thw, act_dtype = 128 * 2**20, 1, 1024, jnp.bfloat16
    elif gen == 5:
        # v5e: no bf16 VPU path -> keep the bias/ReLU6 epilogue in f32.
        vmem_cap, num_tc, default_thw, act_dtype = 128 * 2**20, 1, 1024, jnp.float32
    else:  # unknown / older: conservative defaults.
        vmem_cap, num_tc, default_thw, act_dtype = 64 * 2**20, 1, 512, jnp.float32
    vmem_budget = int(0.85 * vmem_cap)

    in_bytes = jnp.dtype(x_nchw.dtype).itemsize
    out_bytes = in_bytes
    cbytes = jnp.dtype(compute_dtype).itemsize
    abytes = jnp.dtype(act_dtype).itemsize

    # ---- spatial tiling (lane dim) --------------------------------------
    if tile_hw is None:
        tile_hw = default_thw
    tile_hw = max(128, _round_down_mult(int(tile_hw), 128))
    if HW <= tile_hw:
        tile_hw = HW                       # full extent is always a legal block
    n_hw = pl.cdiv(HW, tile_hw)
    # Degenerate-grid guard: keep enough grid steps for pipelining / megacore.
    min_steps = 2 * num_tc
    if B * n_hw < min_steps and HW >= 256:
        splits = -(-min_steps // B)        # ceil
        tile_hw = max(128, _round_down_mult(max(HW // splits, 128), 128))
        n_hw = pl.cdiv(HW, tile_hw)

    # ---- hidden tiling (reduction axis of the 2nd matmul) ---------------
    def itemized_vmem(th, thw):
        wbuf = 1 if th >= hidden else 2
        return int(
            2 * C_in * thw * in_bytes                     # x tiles (2 buffers)
            + 2 * C_out * thw * out_bytes                 # out tiles (2 buffers)
            + wbuf * (th * C_in + C_out * th) * cbytes    # w1, w2 tiles
            + wbuf * th * abytes + C_out * 4              # b1, b2
            + C_out * thw * 4                             # f32 accumulator scratch
            + th * thw * (4 + abytes + cbytes)            # h: f32 dot out + act + bf16
        )

    if tile_h is None:
        tile_h = hidden
    if tile_h < hidden:
        tile_h = max(128, _round_down_mult(int(tile_h), 128))
    while itemized_vmem(tile_h, tile_hw) > vmem_budget and tile_h > 256:
        tile_h = max(256, _round_down_mult(tile_h // 2, 128))
    while itemized_vmem(tile_h, tile_hw) > vmem_budget and tile_hw > 128:
        tile_hw = max(128, _round_down_mult(tile_hw // 2, 128))
        n_hw = pl.cdiv(HW, tile_hw)
    if tile_h >= hidden:
        tile_h, hidden_p = hidden, hidden
    else:
        hidden_p = tile_h * pl.cdiv(hidden, tile_h)
    n_h = hidden_p // tile_h

    # ---- weight / bias prep (one-time, tiny) -----------------------------
    w1_t = jnp.asarray(w1.T, dtype=compute_dtype)                # (hidden, C_in)
    w2_t = jnp.asarray(w2.T, dtype=compute_dtype)                # (C_out, hidden)
    b1_c = jnp.asarray(b1, dtype=act_dtype).reshape(hidden, 1)
    b2_c = jnp.asarray(b2, dtype=jnp.float32).reshape(C_out, 1)
    if hidden_p != hidden:
        pad = hidden_p - hidden
        w1_t = jnp.pad(w1_t, ((0, pad), (0, 0)))   # zero rows -> relu6(0)=0
        b1_c = jnp.pad(b1_c, ((0, pad), (0, 0)))
        w2_t = jnp.pad(w2_t, ((0, 0), (0, pad)))   # zero cols -> no contribution

    x_flat = x_nchw.reshape(B, C_in, HW)           # free reshape, no transpose

    # Single-buffer the resident weights/biases when their index_map is constant.
    wb = 1 if n_h == 1 else None

    vmem_limit = int(min(max(int(1.25 * itemized_vmem(tile_h, tile_hw)),
                             32 * 2**20), vmem_budget))

    flops = 2 * B * HW * (C_in * hidden_p + hidden_p * C_out)
    bytes_accessed = int(x_flat.size * in_bytes + B * C_out * HW * out_bytes
                         + (w1_t.size + w2_t.size) * cbytes
                         + b1_c.size * abytes + b2_c.size * 4)
    cost = pl.CostEstimate(flops=flops, transcendentals=0,
                           bytes_accessed=bytes_accessed)

    kernel = functools.partial(mlp_kernel, act_dtype=act_dtype)

    out_flat = pl.pallas_call(
        kernel,
        out_shape=jax.ShapeDtypeStruct((B, C_out, HW), x_nchw.dtype),
        grid_spec=pltpu.PrefetchScalarGridSpec(
            num_scalar_prefetch=0,
            grid=(B, n_hw, n_h),
            in_specs=[
                _block_spec((None, C_in, tile_hw), lambda b, j, k: (b, 0, j)),
                _block_spec((tile_h, C_in), lambda b, j, k: (k, 0), wb),
                _block_spec((tile_h, 1), lambda b, j, k: (k, 0), wb),
                _block_spec((C_out, tile_h), lambda b, j, k: (0, k), wb),
                _block_spec((C_out, 1), lambda b, j, k: (0, 0), 1),
            ],
            out_specs=pl.BlockSpec((None, C_out, tile_hw),
                                   lambda b, j, k: (b, 0, j)),
            scratch_shapes=[pltpu.VMEM((C_out, tile_hw), jnp.float32)],
        ),
        compiler_params=pltpu.CompilerParams(
            dimension_semantics=("parallel", "parallel", "arbitrary"),
            vmem_limit_bytes=vmem_limit,
        ),
        cost_estimate=cost,
    )(x_flat, w1_t, b1_c, w2_t, b2_c)

    # Free reshape back to NCHW.
    return out_flat.reshape(B, C_out, H, W)


def reference_mlp(x_nchw, w1, b1, w2, b2):
    # Pure-JAX fp32 reference matching PyTorch semantics (1x1 convs).
    x = jnp.einsum("bchw,cd->bdhw", x_nchw, w1) + b1.reshape(1, -1, 1, 1)
    x = jnp.minimum(jnp.maximum(x, 0.0), 6.0)
    x = jnp.einsum("bchw,cd->bdhw", x, w2) + b2.reshape(1, -1, 1, 1)
    return x


if __name__ == "__main__":
    key = jax.random.PRNGKey(0)
    k_x, k_w1, k_b1, k_w2, k_b2 = jax.random.split(key, 5)

    B, C_in, H, W = 2, 4, 16, 16
    hidden = 32
    C_out = C_in  # out_features defaults to in_features

    x = jax.random.normal(k_x, (B, C_in, H, W), dtype=jnp.float32)

    # Conv2d 1x1 weight (out, in, 1, 1) stored here as (in, out).
    w1 = jax.random.normal(k_w1, (C_in, hidden), dtype=jnp.float32) * 0.1
    b1 = jax.random.normal(k_b1, (hidden,), dtype=jnp.float32) * 0.1
    w2 = jax.random.normal(k_w2, (hidden, C_out), dtype=jnp.float32) * 0.1
    b2 = jax.random.normal(k_b2, (C_out,), dtype=jnp.float32) * 0.1

    out = jax.block_until_ready(mlp_pallas(x, w1, b1, w2, b2))
    ref = reference_mlp(x, w1, b1, w2, b2)

    assert out.shape == (B, C_out, H, W)
    # bf16 MXU operands with f32 accumulation -> loosened tolerance vs fp32 ref.
    assert jnp.allclose(out, ref, atol=2e-2, rtol=2e-2), "mismatch vs reference"

    print("KERNEL_OK")
</pallas_src>

<mosaic_0001>
module attributes {stable_mosaic.version = 11 : i64} {
  func.func @mlp_kernel(%arg0: i32, %arg1: i32, %arg2: i32, %arg3: memref<1x4x256xf32, #tpu.memory_space<vmem>>, %arg4: memref<32x4xbf16, #tpu.memory_space<vmem>>, %arg5: memref<32x1xf32, #tpu.memory_space<vmem>>, %arg6: memref<4x32xbf16, #tpu.memory_space<vmem>>, %arg7: memref<4x1xf32, #tpu.memory_space<vmem>>, %arg8: memref<1x4x256xf32, #tpu.memory_space<vmem>>, %arg9: memref<4x256xf32, #tpu.memory_space<vmem>>) attributes {dimension_semantics = [#tpu.dimension_semantics<parallel>, #tpu.dimension_semantics<parallel>, #tpu.dimension_semantics<arbitrary>], iteration_bounds = array<i64: 2, 1, 1>, scalar_prefetch = 0 : i64, scratch_operands = 1 : i64, tpu.core_type = #tpu.core_type<tc>, window_params = [{transform_indices = @transform_0, window_bounds = array<i64: 1, 4, 256>}, {pipeline_mode = #tpu.pipeline_mode<synchronous>, transform_indices = @transform_1, window_bounds = array<i64: 32, 4>}, {pipeline_mode = #tpu.pipeline_mode<synchronous>, transform_indices = @transform_2, window_bounds = array<i64: 32, 1>}, {pipeline_mode = #tpu.pipeline_mode<synchronous>, transform_indices = @transform_3, window_bounds = array<i64: 4, 32>}, {pipeline_mode = #tpu.pipeline_mode<synchronous>, transform_indices = @transform_4, window_bounds = array<i64: 4, 1>}, {transform_indices = @transform_5, window_bounds = array<i64: 1, 4, 256>}]} {
    %c0_i32 = arith.constant 0 : i32
    %0 = arith.cmpi eq, %arg2, %c0_i32 : i32
    %1 = arith.extui %0 : i1 to i32
    %c0_i32_0 = arith.constant 0 : i32
    %2 = arith.cmpi ne, %1, %c0_i32_0 : i32
    scf.if %2 {
      %cst_18 = arith.constant 0.000000e+00 : f32
      %24 = vector.broadcast %cst_18 : f32 to vector<4x256xf32>
      %c0_19 = arith.constant 0 : index
      %c0_20 = arith.constant 0 : index
      %25 = vector.load %arg9[%c0_19, %c0_20] : memref<4x256xf32, #tpu.memory_space<vmem>>, vector<4x256xf32>
      tpu.vector_store %arg9[%c0_19, %c0_20], %24 {strides = array<i32>} : memref<4x256xf32, #tpu.memory_space<vmem>>, vector<4x256xf32>,
    } else {
    }
    %c0 = arith.constant 0 : index
    %c0_1 = arith.constant 0 : index
    %c0_2 = arith.constant 0 : index
    %3 = vector.load %arg3[%c0, %c0_1, %c0_2] : memref<1x4x256xf32, #tpu.memory_space<vmem>>, vector<1x4x256xf32>
    %4 = vector.shape_cast %3 : vector<1x4x256xf32> to vector<4x256xf32>
    %5 = arith.truncf %4 : vector<4x256xf32> to vector<4x256xbf16>
    %c0_3 = arith.constant 0 : index
    %c0_4 = arith.constant 0 : index
    %6 = vector.load %arg4[%c0_3, %c0_4] : memref<32x4xbf16, #tpu.memory_space<vmem>>, vector<32x4xbf16>
    %cst = arith.constant dense<0.000000e+00> : vector<32x256xf32>
    %7 = tpu.matmul %6, %5, %cst {dimension_numbers = #tpu.dot_dimension_numbers<[1], [0], [0], [1], [0, 0, 1, 1], [], []>} : vector<32x4xbf16>, vector<4x256xbf16>, vector<32x256xf32> -> vector<32x256xf32>
    %c0_5 = arith.constant 0 : index
    %c0_6 = arith.constant 0 : index
    %8 = vector.load %arg5[%c0_5, %c0_6] : memref<32x1xf32, #tpu.memory_space<vmem>>, vector<32x1xf32>
    %9 = vector.broadcast %8 : vector<32x1xf32> to vector<32x256xf32>
    %10 = arith.addf %7, %9 : vector<32x256xf32>
    %cst_7 = arith.constant 0.000000e+00 : f32
    %11 = vector.broadcast %cst_7 : f32 to vector<32x256xf32>
    %12 = arith.maximumf %10, %11 : vector<32x256xf32>
    %cst_8 = arith.constant 6.000000e+00 : f32
    %13 = vector.broadcast %cst_8 : f32 to vector<32x256xf32>
    %14 = arith.minimumf %12, %13 : vector<32x256xf32>
    %c0_9 = arith.constant 0 : index
    %c0_10 = arith.constant 0 : index
    %15 = vector.load %arg9[%c0_9, %c0_10] : memref<4x256xf32, #tpu.memory_space<vmem>>, vector<4x256xf32>
    %c0_11 = arith.constant 0 : index
    %c0_12 = arith.constant 0 : index
    %16 = vector.load %arg6[%c0_11, %c0_12] : memref<4x32xbf16, #tpu.memory_space<vmem>>, vector<4x32xbf16>
    %17 = arith.truncf %14 : vector<32x256xf32> to vector<32x256xbf16>
    %cst_13 = arith.constant dense<0.000000e+00> : vector<4x256xf32>
    %18 = tpu.matmul %16, %17, %cst_13 {dimension_numbers = #tpu.dot_dimension_numbers<[1], [0], [0], [1], [0, 0, 1, 1], [], []>} : vector<4x32xbf16>, vector<32x256xbf16>, vector<4x256xf32> -> vector<4x256xf32>
    %19 = arith.addf %15, %18 : vector<4x256xf32>
    %c0_14 = arith.constant 0 : index
    %c0_15 = arith.constant 0 : index
    %20 = vector.load %arg9[%c0_14, %c0_15] : memref<4x256xf32, #tpu.memory_space<vmem>>, vector<4x256xf32>
    tpu.vector_store %arg9[%c0_14, %c0_15], %19 {strides = array<i32>} : memref<4x256xf32, #tpu.memory_space<vmem>>, vector<4x256xf32>,
    %c0_i32_16 = arith.constant 0 : i32
    %21 = arith.cmpi eq, %arg2, %c0_i32_16 : i32
    %22 = arith.extui %21 : i1 to i32
    %c0_i32_17 = arith.constant 0 : i32
    %23 = arith.cmpi ne, %22, %c0_i32_17 : i32
    scf.if %23 {
      %c0_18 = arith.constant 0 : index
      %c0_19 = arith.constant 0 : index
      %24 = vector.load %arg9[%c0_18, %c0_19] : memref<4x256xf32, #tpu.memory_space<vmem>>, vector<4x256xf32>
      %c0_20 = arith.constant 0 : index
      %c0_21 = arith.constant 0 : index
      %25 = vector.load %arg7[%c0_20, %c0_21] : memref<4x1xf32, #tpu.memory_space<vmem>>, vector<4x1xf32>
      %26 = vector.broadcast %25 : vector<4x1xf32> to vector<4x256xf32>
      %27 = arith.addf %24, %26 : vector<4x256xf32>
      %c0_22 = arith.constant 0 : index
      %c0_23 = arith.constant 0 : index
      %c0_24 = arith.constant 0 : index
      %28 = vector.load %arg8[%c0_22, %c0_23, %c0_24] : memref<1x4x256xf32, #tpu.memory_space<vmem>>, vector<1x4x256xf32>
      %29 = vector.shape_cast %28 : vector<1x4x256xf32> to vector<4x256xf32>
      %30 = vector.shape_cast %27 : vector<4x256xf32> to vector<1x4x256xf32>
      tpu.vector_store %arg8[%c0_22, %c0_23, %c0_24], %30 {strides = array<i32>} : memref<1x4x256xf32, #tpu.memory_space<vmem>>, vector<1x4x256xf32>,
    } else {
    }
    return
  }
  func.func @transform_0(%arg0: i32, %arg1: i32, %arg2: i32) -> (i32, i32, i32) {
    %c0_i32 = arith.constant 0 : i32
    %c0_i32_0 = arith.constant 0 : i32
    return %arg0, %c0_i32, %arg1 : i32, i32, i32
  }
  func.func @transform_1(%arg0: i32, %arg1: i32, %arg2: i32) -> (i32, i32) {
    %c0_i32 = arith.constant 0 : i32
    %c0_i32_0 = arith.constant 0 : i32
    return %arg2, %c0_i32 : i32, i32
  }
  func.func @transform_2(%arg0: i32, %arg1: i32, %arg2: i32) -> (i32, i32) {
    %c0_i32 = arith.constant 0 : i32
    %c0_i32_0 = arith.constant 0 : i32
    return %arg2, %c0_i32 : i32, i32
  }
  func.func @transform_3(%arg0: i32, %arg1: i32, %arg2: i32) -> (i32, i32) {
    %c0_i32 = arith.constant 0 : i32
    %c0_i32_0 = arith.constant 0 : i32
    return %c0_i32, %arg2 : i32, i32
  }
  func.func @transform_4(%arg0: i32, %arg1: i32, %arg2: i32) -> (i32, i32) {
    %c0_i32 = arith.constant 0 : i32
    %c0_i32_0 = arith.constant 0 : i32
    %c0_i32_1 = arith.constant 0 : i32
    return %c0_i32, %c0_i32_0 : i32, i32
  }
  func.func @transform_5(%arg0: i32, %arg1: i32, %arg2: i32) -> (i32, i32, i32) {
    %c0_i32 = arith.constant 0 : i32
    %c0_i32_0 = arith.constant 0 : i32
    return %arg0, %c0_i32, %arg1 : i32, i32, i32
  }
}

</mosaic_0001>

<bundles_post_ra>
// kernel: tpu_custom_call.1
= control target key start
LH: loop header
LB: loop body
LE: loop exit
PB: predicated region body
PF: predicated region fallthrough
CT: control target
= control target key end

     0   :  { %10 = vsyncpa [#allocation4], 0  ;;  %s1007_s0 = inlined_call_operand.vmem [shape: f32[2,4,256], index: 0, kind: input, shape index: {}]   ;;  %s1008_s1 = inlined_call_operand.vmem [shape: bf16[32,4], index: 1, kind: input, shape index: {}]   ;;  %s1009_s2 = inlined_call_operand.vmem [shape: f32[32,1], index: 2, kind: input, shape index: {}]   ;;  %s1010_s3 = inlined_call_operand.vmem [shape: bf16[4,32], index: 3, kind: input, shape index: {}]   ;;  %s1011_s4 = inlined_call_operand.vmem [shape: f32[4,1], index: 4, kind: input, shape index: {}]   ;;  %s1012_s5 = inlined_call_operand.hbm [shape: f32[2,4,256], index: 5, kind: output, shape index: {}]  }
   0x1   :  { %12 = vsyncpa [#allocation4 + $0x1], 0  ;;  %s871_s18 = smov 0   ;;  %s873_s19 = smov 0  }
   0x2   :  { %s875_s20 = smov 0   ;;  %s877_s21 = smov 0  }
   0x3   :  { %s879_s22 = smov 0   ;;  %s881_s23 = smov 0  }
   0x4 LB: > { %s672_s24 = sadd.s32 4294967295, %s836_s23   ;;  %s673_s25 = sadd.s32 4294967294, %s836_s23   ;;  %s836_s23 = sphi %s881_s23, %s18_s23   ;;  %s832_s22 = sphi %s879_s22, %s1019_s22   ;;  %s828_s21 = sphi %s877_s21, %s1018_s21   ;;  %s824_s20 = sphi %s875_s20, %s1017_s20   ;;  %s820_s19 = sphi %s873_s19, %s1016_s19   ;;  %s816_s18 = sphi %s871_s18, %s1015_s18  }
   0x5   : > { %s37_s26 = sadd.s32 1, %s832_s22  ;;  %s173_s27 = sadd.s32 1, %s824_s20 }
   0x6   : > { %p39_p0 = scmp.ge.s32.totalorder %s37_s26, 2  ;;  %p183_p1 = scmp.ne.s32.totalorder %s824_s20, %s820_s19 }
   0x7   : > { %p184_p2 = scmp.eq.s32.totalorder %s672_s24, 1  ;;  %p189_p3 = scmp.ne.s32.totalorder %s820_s19, %s816_s18 }
   0x8   : > { %s1021_s26 = smov (%p39_p0, %s37_s26), 0  ;;  %p190_p5 = scmp.eq.s32.totalorder %s673_s25, 1 }
   0x9   : > { %p911_p4 = por %p184_p2, %p183_p1  ;;  %s168_s29 = ssub.s32 %s832_s22, %s1021_s26 }
   0xa   : > { %p679_p6 = scmp.ge.s32.totalorder %s836_s23, 1  ;;  %p171_p7 = scmp.eq.s32.totalorder %s168_s29, 0 }
   0xb   : > { %p918_p8 = por %p190_p5, %p189_p3  ;;  %p249_p9 = scmp.lt.s32.totalorder %s836_s23, 3 }
   0xc   : > { %s924_s6 = scalar_select %p171_p7, %s824_s20, %s173_s27  }
   0xd   : > { %p250_p10 = pnand %p679_p6, %p249_p9 }
   0xe   : > { %p296_p11 = scmp.lt.s32.totalorder (!%p250_p10), %s828_s21, 1  ;;  %v838_v0 = vmov (!%p250_p10), 0   ;;  %v338_v1 = vld [vmem:[%s1009_s2] sm:$0xff] (!%p250_p10)  ;;  %v340_v2 = vld [vmem:[%s1009_s2 + $0x10] sm:$0xff] (!%p250_p10)  ;;  %v339_v3 = vld [vmem:[%s1009_s2 + $0x8] sm:$0xff] (!%p250_p10)  ;;  %vm379_vm0 = vcmask (!%p250_p10), 1041408   ;;  %v524_v56 = vlaneseq (!%p250_p10) }
   0xf   : > { %253 = sbr.rel (%p250_p10) target bundleno = 501 (0x1f5), region = 40  ;;  %418 = vmatprep.mubr.bf16.mxu0 (!%p250_p10), %v838_v0  ;;  %753 = vset.pattern.permute.xlu0 (!%p250_p10), %v838_v0  ;;  %v341_v4 = vld [vmem:[%s1009_s2 + $0x18] sm:$0xff] (!%p250_p10)  ;;  %v516_v8 = vld [vmem:[%s1011_s4] sm:$0xf] (!%p250_p10)  ;;  %vm372_vm1 = vcmask (!%p250_p10), 31744   ;;  %v757_v12 = vld [vmem:[%s1008_s1 + $0x8] sm:$0xff] (!%p250_p10)  }
  0x10   : > { %754 = vset.pattern.permute.xlu1 (!%p250_p10), %v838_v0  ;;  %497 = vmatprep.mubr.bf16.mxu1 (!%p250_p10), %v838_v0  ;;  %v756_v11 = vld [vmem:[%s1008_s1] sm:$0xff] (!%p250_p10)   ;;  %vm461_vm2 = vcmask (!%p250_p10), 261120   ;;  %v839_v54 = vmov (!%p250_p10), 839922192   ;;  %s292_s13 = sand.u32 (!%p250_p10), 1, %s820_s19   ;;  %v525_v58 = vshrl.u32 (!%p250_p10), %v524_v56, 7 }
  0x11   : > { %344 = vperm.xlu0 (!%p250_p10), %753, %v338_v1   ;;  %354 = vperm.xlu1 (!%p250_p10), %754, %v340_v2   ;;  %v456_v53 = vld [vmem:[%s1010_s3] sm:$0x3] (!%p250_p10)  ;;  %v522_v55 = vunpack.c.l.s4 (!%p250_p10), %v839_v54  ;;  %s680_s14 = sshll.u32 (!%p250_p10), %s292_s13, 3  ;;  %s695_s15 = sshll.u32 (!%p250_p10), %s828_s21, 7 }
  0x12   : > { %s294_s16 = scalar_lea.vmem (!%p250_p10), [#allocation3], %s680_s14  ;;  %s960_s27 = scalar_lea.hbm (!%p250_p10), %s1012_s5, %s695_s15 }
  0x13   : > { %v523_v57 = vunpack.c.0.s8 (!%p250_p10), %v522_v55  ;;  %s532_s29 = scalar_lea.sflag (!%p250_p10), [#allocation4], %s292_s13 }
  0x15   : > { %349 = vperm.xlu0 (!%p250_p10), %753, %v339_v3   ;;  %359 = vperm.xlu1 (!%p250_p10), %754, %v341_v4   ;;  %v526_v59 = vsub.s32 (!%p250_p10), %v523_v57, %v525_v58 }
  0x16   : > { %s297_s7 = scalar_select %p296_p11, %s828_s21, 1 }
  0x18   : > { %s694_s12 = sshll.u32 %s297_s7, 3  ;;  %s840_s7 = smov [#allocation3]  }
  0x19   : > { %s303_s17 = scalar_lea.vmem %s1007_s0, %s694_s12  ;;  %519 = vperm.xlu0 %753, %v516_v8   ;;  %s762_s8 = sshll.u32 %s840_s7, 4  ;;  %s763_s8 = int_to_ptr.vmem [resolvable:$false] %s762_s8 }
  0x1a   : > { %v328_v5 = vld [vmem:[%s303_s17] sm:$0xff]  ;;  %s548_s17 = sshll.u32 %s294_s16, 4  ;;  %s764_s9 = scalar_lea.vmem %s763_s8, 256  ;;  %s962_s17 = int_to_ptr.vmem [resolvable:$true] %s548_s17 }
  0x1b   : > { %v330_v6 = vcombine.high %v328_v5, %v328_v5  ;;  %v332_v7 = vpack.c.bf16 %v328_v5, %v328_v5  ;;  %s758_s21 = scalar_lea.vmem %s962_s17, 128  ;;  %p765_p1 = scmp.lt.s32.totalorder %s962_s17, %s763_s8 }
  0x1c   : > { %p759_p12 = scmp.ne.s32.totalorder %s962_s17, %s758_s21  ;;  %p766_p2 = scmp.lt.s32.totalorder %s764_s9, %s758_s21 }
  0x1d   : > { %v333_v9 = vpack.c.bf16 %v330_v6, %v330_v6  ;;  %v381_v10 = vsel %vm379_vm0, %v332_v7, 0 }
  0x1e   : > { %p760_p13 = pnand %p759_p12, %p911_p4  ;;  %p767_p3 = por %p766_p2, %p765_p1 }
  0x1f   : > { %685 = vmatprep.subr.msk.bf16.mxu0 %vm379_vm0, %v333_v9 }
  0x20   : > { %387 = vmatpush1.bf16.msra.mxu0 %v381_v10  ;;  %p761_p0 = pneg %p760_p13 }
  0x22   : > { %p768_p5 = pnand %p767_p3, %p761_p0 }
  0x23   : > { %686 = vmatmul.mubr.msk.bf16.vlgmr.msra.gmra.mrb[0].mxu0 %vm372_vm1, %v756_v11 }
  0x24   : > { %428 = vmatprep.mubr.bf16.mxu0 %v838_v0 }
  0x2b   : > { %687 = vmatmul.mubr.msk.bf16.gmra.mrb[4].mxu0 %vm372_vm1, %v757_v12 }
  0x90   : > { %v345_v13 = vpop.permute.xlu0 %344  ;;  %v355_v24 = vpop.permute.xlu1 %354 }
  0x94   : > { %v350_v17 = vpop.permute.xlu0 %349  ;;  %v360_v36 = vpop.permute.xlu1 %359 }
  0x98   : > { %v520_v60 = vpop.permute.xlu0 %519 }
  0x99   : > { %v527_v63 = vrot.slane %v520_v60, %v526_v59 }
  0xf6   : > { %v420_v14 = vpop.f32.mrb[0].mxu0 }
  0xf7   : > { %v421_v15 = vadd.f32 %v420_v14, %v345_v13  ;;  %v422_v16 = vpop.f32.mrb[1].mxu0 }
  0xf8   : > { %v423_v18 = vadd.f32 %v422_v16, %v345_v13  ;;  %v424_v19 = vpop.f32.mrb[2].mxu0 }
  0xf9   : > { %v439_v20 = vmax.f32 %v421_v15, 0.0  ;;  %v425_v21 = vadd.f32 %v424_v19, %v350_v17  ;;  %v426_v22 = vpop.f32.mrb[3].mxu0 }
  0xfa   : > { %v440_v23 = vmax.f32 %v423_v18, 0.0  ;;  %v427_v25 = vadd.f32 %v426_v22, %v350_v17 }
  0xfb   : > { %v441_v26 = vmax.f32 %v425_v21, 0.0  ;;  %v447_v28 = vmin.f32 %v439_v20, 6.0 }
  0xfc   : > { %v442_v27 = vmax.f32 %v427_v25, 0.0  ;;  %v448_v30 = vmin.f32 %v440_v23, 6.0 }
  0xfd   : > { %v449_v29 = vmin.f32 %v441_v26, 6.0 }
  0xfe   : > { %v450_v31 = vmin.f32 %v442_v27, 6.0  ;;  %v430_v32 = vpop.f32.mrb[4].mxu0 }
  0xff   : > { %v431_v33 = vadd.f32 %v430_v32, %v355_v24  ;;  %v432_v34 = vpop.f32.mrb[5].mxu0  ;;  %v457_v35 = vpack.c.bf16 %v449_v29, %v447_v28 }
 0x100   : > { %v433_v37 = vadd.f32 %v432_v34, %v355_v24  ;;  %v434_v38 = vpop.f32.mrb[6].mxu0  ;;  %v458_v39 = vpack.c.bf16 %v450_v31, %v448_v30 }
 0x101   : > { %v443_v40 = vmax.f32 %v431_v33, 0.0  ;;  %v435_v41 = vadd.f32 %v434_v38, %v360_v36  ;;  %v436_v42 = vpop.f32.mrb[7].mxu0 }
 0x102   : > { %v444_v43 = vmax.f32 %v433_v37, 0.0  ;;  %v437_v44 = vadd.f32 %v436_v42, %v360_v36  ;;  %465 = vmatprep.subr.bf16.mxu1 %v458_v39 }
 0x103   : > { %v445_v45 = vmax.f32 %v435_v41, 0.0  ;;  %466 = vmatpush1.bf16.msra.mxu1 %v457_v35  ;;  %v451_v47 = vmin.f32 %v443_v40, 6.0 }
 0x104   : > { %v446_v46 = vmax.f32 %v437_v44, 0.0  ;;  %v452_v49 = vmin.f32 %v444_v43, 6.0 }
 0x105   : > { %v453_v48 = vmin.f32 %v445_v45, 6.0 }
 0x106   : > { %v454_v50 = vmin.f32 %v446_v46, 6.0 }
 0x107   : > { %v459_v51 = vpack.c.bf16 %v453_v48, %v451_v47 }
 0x108   : > { %v460_v52 = vpack.c.bf16 %v454_v50, %v452_v49 }
 0x10a   : > { %467 = vmatprep.subr.bf16.mxu1 %v460_v52 }
 0x10b   : > { %468 = vmatpush1.bf16.msra.mxu1 %v459_v51 }
 0x10e   : > { %688 = vmatmul.mubr.msk.bf16.vlgmr.msra.gmra.mrb[0].mxu1 %vm461_vm2, %v456_v53 }
 0x1e1   : > { %v499_v61 = vpop.f32.mrb[0].mxu1 }
 0x1e2   : > { %v501_v62 = vpop.f32.mrb[1].mxu1 }
 0x1e3   : > { %v508_v0 = vcombine.low %v499_v61, %v501_v62  ;;  %v503_v1 = vpop.f32.mrb[2].mxu1 }
 0x1e4   : > { %v504_v2 = vpop.f32.mrb[3].mxu1 }
 0x1e5   : > { %v529_v3 = vadd.f32 %v527_v63, %v508_v0 }
 0x1e7   : > { %530 = vst [vmem:[%s294_s16] sm:$0xff] %v529_v3 }
 0x1e8   : > { %771 = shalt.err (!%p768_p5)
}
 0x1e9   : > { %s772_s10 = scalar_lea.hbm %s960_s27, 128  ;;  %s776_s13 = scalar_lea.hbm %s1012_s5, 256 }
 0x1ea   : > { %p773_p6 = scmp.ne.s32.totalorder %s960_s27, %s772_s10  ;;  %p777_p10 = scmp.lt.u32.totalorder %s960_s27, %s1012_s5 }
 0x1eb   : > { %p778_p11 = scmp.lt.u32.totalorder %s776_s13, %s772_s10  ;;  %p780_p13 = scmp.lt.u32.totalorder %s772_s10, %s960_s27 }
 0x1ec   : > { %p774_p7 = pnand %p773_p6, %p911_p4 }
 0x1ed   : > { %p779_p12 = por %p778_p11, %p777_p10 }
 0x1ee   : > { %p775_p9 = pneg %p774_p7 }
 0x1ef   : > { %p781_p0 = por %p780_p13, %p779_p12 }
 0x1f1   : > { %p782_p1 = pnand %p781_p0, %p775_p9 }
 0x1f3   : > { %785 = shalt.err (!%p782_p1)
}
 0x1f4   : > { %696 = dma.vmem_to_hbm [thread:$0]  (%p911_p4), %s962_s17, 128, %s960_s27, %s532_s29  }
 0x1f5 PF: > { %p702_p2 = scmp.ge.s32.totalorder %s836_s23, 2  ;;  %s560_s16 = sand.u32 1, %s816_s18  }
 0x1f6   : > { %s561_s24 = scalar_lea.sflag [#allocation4], %s560_s16 }
 0x1f7   : > { %p699_p3 = pnand %p702_p2, %p918_p8 }
 0x1f9   : > { %811 = dma.done.wait (!%p699_p3), %s561_s24, 128  }
 0x1fa   : > { %813 = vsyncadd (!%p699_p3), %s561_s24, 4294967168  ;;  %s18_s23 = sadd.s32 1, %s836_s23   ;;  %s1015_s18 = smov %s820_s19 }
 0x1fb   : > { %p15_p5 = scmp.ge.s32.totalorder %s18_s23, 4   ;;  %s1016_s19 = smov %s824_s20 }
 0x1fc   : > { %s1017_s20 = smov %s924_s6  ;;  %s1018_s21 = smov %s832_s22 }
 0x1fd   : > { %s1019_s22 = smov %s1021_s26  ;;  %17 = sbr.rel (!%p15_p5) target bundleno = 4 (0x4), region = 92 }
 0x204   :  { %566 = vsyncpa [#allocation4], 1 }
 0x205   :  { %568 = vsyncpa [#allocation4 + $0x1], 1 }

</bundles_post_ra>
